<compile_context>
chip_gen: v6e
topology: v6e:2x2x1
jax: 0.10.0
libtpu: 0.0.40
codegen_flags: <defaults>
</compile_context>

<pallas_src>
import functools

import jax
import jax.numpy as jnp
from jax.experimental import pallas as pl
from jax.experimental.pallas import tpu as pltpu

# ---- packed layout constants -------------------------------------------------
SS_D, SA_D, SE_D, SB_D, C_D = 130, 3, 1, 1, 3
K_PACK = SS_D + SA_D + SE_D + SB_D + C_D + 1   # 139; last column is the ones/bias column
EMB = 64
N_PACK = 5 * EMB                               # 320: [ss | sa | se | sb | c] output blocks
OUT_PAD = 128                                  # lane-dense padded nA for the final store


def _silu(x):
    return x * jax.nn.sigmoid(x)


def _covid_kernel(x_ref, w1_ref, w_s_ref, b_s_ref,
                  w_fc1_ref, b_fc1_ref, w_fc2_ref, b_fc2_ref, out_ref):
    dot = functools.partial(jnp.dot, preferred_element_type=jnp.float32)

    # Fused embedding matmul: (TB,139) @ (139,320).  Block-diagonal weight,
    # biases folded via the ones column -> no separate bias adds here.
    a = dot(x_ref[...], w1_ref[...])

    e = jax.nn.sigmoid(a[:, :4 * EMB])          # [e_ss | e_sa | e_se | e_sb]
    c = _silu(a[:, 4 * EMB:])                   # c_emb = SiLU(Linear(c))

    # s = e_ss * e_se * e_sa * e_sb  (tree product over the four 64-wide blocks)
    p = e[:, :2 * EMB] * e[:, 2 * EMB:]         # [e_ss*e_se | e_sa*e_sb]
    s = p[:, :EMB] * p[:, EMB:]

    # s_emb: Linear(64, 64) -> SiLU
    s = _silu(dot(s, w_s_ref[...]) + b_s_ref[...])
    sc = s * c

    # fc: Linear(64, 64) -> SiLU -> Linear(64, nA padded to 128 lanes)
    h = _silu(dot(sc, w_fc1_ref[...]) + b_fc1_ref[...])
    out_ref[...] = dot(h, w_fc2_ref[...]) + b_fc2_ref[...]


def pack_params(params, nA):
    """Build the block-diagonal embedding weight and the lane-padded fc2."""
    assert params["w_c"].shape[0] == C_D
    w1 = jnp.zeros((K_PACK, N_PACK), jnp.float32)
    r = 0
    w1 = w1.at[r:r + SS_D, 0 * EMB:1 * EMB].set(params["w_ss"]); r += SS_D
    w1 = w1.at[r:r + SA_D, 1 * EMB:2 * EMB].set(params["w_sa"]); r += SA_D
    w1 = w1.at[r:r + SE_D, 2 * EMB:3 * EMB].set(params["w_se"]); r += SE_D
    w1 = w1.at[r:r + SB_D, 3 * EMB:4 * EMB].set(params["w_sb"]); r += SB_D
    w1 = w1.at[r:r + C_D,  4 * EMB:5 * EMB].set(params["w_c"]);  r += C_D
    bias_row = jnp.concatenate(
        [params["b_ss"], params["b_sa"], params["b_se"], params["b_sb"], params["b_c"]],
        axis=-1)                                  # (1, 320)
    w1 = w1.at[r, :].set(bias_row[0])             # ones-column row carries all biases

    w_fc2 = jnp.zeros((EMB, OUT_PAD), jnp.float32).at[:, :nA].set(params["w_fc2"])
    b_fc2 = jnp.zeros((1, OUT_PAD), jnp.float32).at[:, :nA].set(params["b_fc2"])
    return dict(w1=w1, w_s=params["w_s"], b_s=params["b_s"],
                w_fc1=params["w_fc1"], b_fc1=params["b_fc1"],
                w_fc2=w_fc2, b_fc2=b_fc2)


def covid_forward(packed, state, desired_return, desired_horizon,
                  objectives, scaling_factor, nA, tb_max=1024):
    """Glue (indexing / concat / flatten / pack) in JAX; dense compute in Pallas."""
    sb, ss, se, sa = state
    B = ss.shape[0]

    # __init__: scaling_factor[:, objectives + (len(scaling_factor) - 1,)]
    # torch len() on a 2-D tensor is shape[0]; replicated exactly (incl. its quirks).
    sel = tuple(objectives) + (scaling_factor.shape[0] - 1,)
    scale = scaling_factor[:, jnp.array(sel)]

    # forward: desired_return = desired_return[:, objectives]; c = cat(...) * scale
    dr = desired_return[:, jnp.array(objectives)]
    c = (jnp.concatenate([dr, desired_horizon], axis=-1) * scale).astype(jnp.float32)

    # Packed input: [ss_flat | sa | se | sb | c | ones]  (column order == w1 row order)
    x = jnp.concatenate(
        [ss.reshape(B, -1).astype(jnp.float32),
         sa.astype(jnp.float32), se.astype(jnp.float32), sb.astype(jnp.float32),
         c, jnp.ones((B, 1), jnp.float32)], axis=-1)          # (B, 139)

    # Batch tiling: single full-size block for small B; 1024-row tiles otherwise.
    if B <= tb_max:
        tb, bp = B, B
    else:
        tb = tb_max
        bp = pl.cdiv(B, tb) * tb
        x = jnp.pad(x, ((0, bp - B), (0, 0)))
    grid = (bp // tb,)

    const2d = lambda i: (0, 0)   # weights/biases stay VMEM-resident across grid steps
    out = pl.pallas_call(
        _covid_kernel,
        out_shape=jax.ShapeDtypeStruct((bp, OUT_PAD), jnp.float32),
        grid=grid,
        in_specs=[
            pl.BlockSpec((tb, K_PACK), lambda i: (i, 0)),     # streamed batch tile
            pl.BlockSpec((K_PACK, N_PACK), const2d),          # packed embedding weight
            pl.BlockSpec((EMB, EMB), const2d),                # w_s
            pl.BlockSpec((1, EMB), const2d),                  # b_s
            pl.BlockSpec((EMB, EMB), const2d),                # w_fc1
            pl.BlockSpec((1, EMB), const2d),                  # b_fc1
            pl.BlockSpec((EMB, OUT_PAD), const2d),            # w_fc2 (padded)
            pl.BlockSpec((1, OUT_PAD), const2d),              # b_fc2 (padded)
        ],
        out_specs=pl.BlockSpec((tb, OUT_PAD), lambda i: (i, 0)),
        compiler_params=pltpu.CompilerParams(
            dimension_semantics=("parallel",)),
    )(x, packed["w1"], packed["w_s"], packed["b_s"],
      packed["w_fc1"], packed["b_fc1"], packed["w_fc2"], packed["b_fc2"])

    return out[:B, :nA]


# ---- pure-JAX reference (for correctness check only) --------------------------
def covid_forward_ref(params, state, desired_return, desired_horizon,
                      objectives, scaling_factor):
    sb, ss, se, sa = state
    B = ss.shape[0]
    sel = tuple(objectives) + (scaling_factor.shape[0] - 1,)
    scale = scaling_factor[:, jnp.array(sel)]
    dr = desired_return[:, jnp.array(objectives)]
    c = jnp.concatenate([dr, desired_horizon], axis=-1) * scale
    hp = jax.lax.Precision.HIGHEST
    lin = lambda x, w, b: jnp.dot(x, w, precision=hp) + b
    sig = jax.nn.sigmoid
    e_ss = sig(lin(ss.reshape(B, -1), params["w_ss"], params["b_ss"]))
    e_se = sig(lin(se, params["w_se"], params["b_se"]))
    e_sa = sig(lin(sa, params["w_sa"], params["b_sa"]))
    e_sb = sig(lin(sb, params["w_sb"], params["b_sb"]))
    s = e_ss * e_se * e_sa * e_sb
    s = _silu(lin(s, params["w_s"], params["b_s"]))
    cc = _silu(lin(c, params["w_c"], params["b_c"]))
    h = _silu(lin(s * cc, params["w_fc1"], params["b_fc1"]))
    return lin(h, params["w_fc2"], params["b_fc2"])


def _init_linear(key, fan_in, fan_out):
    """Deterministic PyTorch-style Linear init: U(-1/sqrt(fan_in), 1/sqrt(fan_in))."""
    kw, kb = jax.random.split(key)
    bound = 1.0 / (fan_in ** 0.5)
    w = jax.random.uniform(kw, (fan_in, fan_out), jnp.float32, -bound, bound)
    b = jax.random.uniform(kb, (1, fan_out), jnp.float32, -bound, bound)
    return w, b


def make_params(key, nA, c_dim):
    ks = jax.random.split(key, 7)
    p = {}
    p["w_ss"], p["b_ss"] = _init_linear(ks[0], 130, 64)
    p["w_se"], p["b_se"] = _init_linear(ks[1], 1, 64)
    p["w_sa"], p["b_sa"] = _init_linear(ks[2], 3, 64)
    # with_budget=False -> sb_emb = copy.deepcopy(se_emb): identical initial weights
    p["w_sb"], p["b_sb"] = p["w_se"], p["b_se"]
    p["w_s"], p["b_s"] = _init_linear(ks[3], 64, 64)
    p["w_c"], p["b_c"] = _init_linear(ks[4], c_dim, 64)
    p["w_fc1"], p["b_fc1"] = _init_linear(ks[5], 64, 64)
    p["w_fc2"], p["b_fc2"] = _init_linear(ks[6], 64, nA)
    return p


if __name__ == "__main__":
    key = jax.random.PRNGKey(0)
    B = 2
    nA = 6
    objectives = (0, 2)                 # subset of the 3 return objectives
    c_dim = len(objectives) + 1         # == self.scaling_factor.shape[-1]

    k_params, k_ss, k_se, k_sa, k_sb, k_dr, k_dh = jax.random.split(key, 7)
    params = make_params(k_params, nA, c_dim)
    packed = pack_params(params, nA)

    # scaling_factor: 2-D, one row, (objectives + horizon) columns
    scaling_factor = jnp.array([[0.1, 0.2, 0.05, 0.01]], dtype=jnp.float32)

    # state = (sb, ss, se, sa)
    ss = jax.random.normal(k_ss, (B, 10, 13), jnp.float32)   # flattened to 130
    se = jax.random.normal(k_se, (B, 1), jnp.float32)
    sa = jax.random.normal(k_sa, (B, 3), jnp.float32)
    sb = jax.random.normal(k_sb, (B, 1), jnp.float32)
    state = (sb, ss, se, sa)

    desired_return = jax.random.normal(k_dr, (B, 3), jnp.float32)
    desired_horizon = jax.random.normal(k_dh, (B, 1), jnp.float32)

    log_prob = covid_forward(packed, state, desired_return, desired_horizon,
                             objectives, scaling_factor, nA)
    jax.block_until_ready(log_prob)
    assert log_prob.shape == (B, nA) and log_prob.dtype == jnp.float32

    ref = covid_forward_ref(params, state, desired_return, desired_horizon,
                            objectives, scaling_factor)
    err = float(jnp.max(jnp.abs(log_prob - ref)))
    assert err < 1e-3, f"kernel vs reference mismatch: max abs err {err}"
    print("KERNEL_OK")
</pallas_src>

<mosaic_0001>
module attributes {stable_mosaic.version = 11 : i64} {
  func.func @_covid_kernel(%arg0: i32, %arg1: memref<2x139xf32, #tpu.memory_space<vmem>>, %arg2: memref<139x320xf32, #tpu.memory_space<vmem>>, %arg3: memref<64x64xf32, #tpu.memory_space<vmem>>, %arg4: memref<1x64xf32, #tpu.memory_space<vmem>>, %arg5: memref<64x64xf32, #tpu.memory_space<vmem>>, %arg6: memref<1x64xf32, #tpu.memory_space<vmem>>, %arg7: memref<64x128xf32, #tpu.memory_space<vmem>>, %arg8: memref<1x128xf32, #tpu.memory_space<vmem>>, %arg9: memref<2x128xf32, #tpu.memory_space<vmem>>) attributes {dimension_semantics = [#tpu.dimension_semantics<parallel>], iteration_bounds = array<i64: 1>, scalar_prefetch = 0 : i64, scratch_operands = 0 : i64, tpu.core_type = #tpu.core_type<tc>, window_params = [{transform_indices = @transform_0, window_bounds = array<i64: 2, 139>}, {pipeline_mode = #tpu.pipeline_mode<synchronous>, transform_indices = @transform_1, window_bounds = array<i64: 139, 320>}, {pipeline_mode = #tpu.pipeline_mode<synchronous>, transform_indices = @transform_2, window_bounds = array<i64: 64, 64>}, {pipeline_mode = #tpu.pipeline_mode<synchronous>, transform_indices = @transform_3, window_bounds = array<i64: 1, 64>}, {pipeline_mode = #tpu.pipeline_mode<synchronous>, transform_indices = @transform_4, window_bounds = array<i64: 64, 64>}, {pipeline_mode = #tpu.pipeline_mode<synchronous>, transform_indices = @transform_5, window_bounds = array<i64: 1, 64>}, {pipeline_mode = #tpu.pipeline_mode<synchronous>, transform_indices = @transform_6, window_bounds = array<i64: 64, 128>}, {pipeline_mode = #tpu.pipeline_mode<synchronous>, transform_indices = @transform_7, window_bounds = array<i64: 1, 128>}, {transform_indices = @transform_8, window_bounds = array<i64: 2, 128>}]} {
    %c0 = arith.constant 0 : index
    %c0_0 = arith.constant 0 : index
    %0 = vector.load %arg1[%c0, %c0_0] : memref<2x139xf32, #tpu.memory_space<vmem>>, vector<2x139xf32>
    %c0_1 = arith.constant 0 : index
    %c0_2 = arith.constant 0 : index
    %1 = vector.load %arg2[%c0_1, %c0_2] : memref<139x320xf32, #tpu.memory_space<vmem>>, vector<139x320xf32>
    %cst = arith.constant dense<0.000000e+00> : vector<2x320xf32>
    %2 = tpu.matmul %0, %1, %cst {dimension_numbers = #tpu.dot_dimension_numbers<[1], [0], [0], [1], [0, 0, 1, 1], [], []>} : vector<2x139xf32>, vector<139x320xf32>, vector<2x320xf32> -> vector<2x320xf32>
    %3 = vector.extract_strided_slice %2 {offsets = [0, 0], sizes = [2, 256], strides = [1, 1]} : vector<2x320xf32> to vector<2x256xf32>
    %4 = arith.negf %3 : vector<2x256xf32>
    %5 = math.exp %4 : vector<2x256xf32>
    %cst_3 = arith.constant 1.000000e+00 : f32
    %6 = vector.broadcast %cst_3 : f32 to vector<2x256xf32>
    %7 = arith.addf %6, %5 : vector<2x256xf32>
    %8 = arith.divf %6, %7 : vector<2x256xf32>
    %9 = vector.extract_strided_slice %2 {offsets = [0, 256], sizes = [2, 64], strides = [1, 1]} : vector<2x320xf32> to vector<2x64xf32>
    %10 = arith.negf %9 : vector<2x64xf32>
    %11 = math.exp %10 : vector<2x64xf32>
    %cst_4 = arith.constant 1.000000e+00 : f32
    %12 = vector.broadcast %cst_4 : f32 to vector<2x64xf32>
    %13 = arith.addf %12, %11 : vector<2x64xf32>
    %14 = arith.divf %12, %13 : vector<2x64xf32>
    %15 = arith.mulf %9, %14 : vector<2x64xf32>
    %16 = vector.extract_strided_slice %8 {offsets = [0, 0], sizes = [2, 128], strides = [1, 1]} : vector<2x256xf32> to vector<2x128xf32>
    %17 = vector.extract_strided_slice %8 {offsets = [0, 128], sizes = [2, 128], strides = [1, 1]} : vector<2x256xf32> to vector<2x128xf32>
    %18 = arith.mulf %16, %17 : vector<2x128xf32>
    %19 = vector.extract_strided_slice %18 {offsets = [0, 0], sizes = [2, 64], strides = [1, 1]} : vector<2x128xf32> to vector<2x64xf32>
    %20 = vector.extract_strided_slice %18 {offsets = [0, 64], sizes = [2, 64], strides = [1, 1]} : vector<2x128xf32> to vector<2x64xf32>
    %21 = arith.mulf %19, %20 : vector<2x64xf32>
    %c0_5 = arith.constant 0 : index
    %c0_6 = arith.constant 0 : index
    %22 = vector.load %arg3[%c0_5, %c0_6] : memref<64x64xf32, #tpu.memory_space<vmem>>, vector<64x64xf32>
    %cst_7 = arith.constant dense<0.000000e+00> : vector<2x64xf32>
    %23 = tpu.matmul %21, %22, %cst_7 {dimension_numbers = #tpu.dot_dimension_numbers<[1], [0], [0], [1], [0, 0, 1, 1], [], []>} : vector<2x64xf32>, vector<64x64xf32>, vector<2x64xf32> -> vector<2x64xf32>
    %c0_8 = arith.constant 0 : index
    %c0_9 = arith.constant 0 : index
    %24 = vector.load %arg4[%c0_8, %c0_9] : memref<1x64xf32, #tpu.memory_space<vmem>>, vector<1x64xf32>
    %25 = vector.broadcast %24 : vector<1x64xf32> to vector<2x64xf32>
    %26 = arith.addf %23, %25 : vector<2x64xf32>
    %27 = arith.negf %26 : vector<2x64xf32>
    %28 = math.exp %27 : vector<2x64xf32>
    %cst_10 = arith.constant 1.000000e+00 : f32
    %29 = vector.broadcast %cst_10 : f32 to vector<2x64xf32>
    %30 = arith.addf %29, %28 : vector<2x64xf32>
    %31 = arith.divf %29, %30 : vector<2x64xf32>
    %32 = arith.mulf %26, %31 : vector<2x64xf32>
    %33 = arith.mulf %32, %15 : vector<2x64xf32>
    %c0_11 = arith.constant 0 : index
    %c0_12 = arith.constant 0 : index
    %34 = vector.load %arg5[%c0_11, %c0_12] : memref<64x64xf32, #tpu.memory_space<vmem>>, vector<64x64xf32>
    %cst_13 = arith.constant dense<0.000000e+00> : vector<2x64xf32>
    %35 = tpu.matmul %33, %34, %cst_13 {dimension_numbers = #tpu.dot_dimension_numbers<[1], [0], [0], [1], [0, 0, 1, 1], [], []>} : vector<2x64xf32>, vector<64x64xf32>, vector<2x64xf32> -> vector<2x64xf32>
    %c0_14 = arith.constant 0 : index
    %c0_15 = arith.constant 0 : index
    %36 = vector.load %arg6[%c0_14, %c0_15] : memref<1x64xf32, #tpu.memory_space<vmem>>, vector<1x64xf32>
    %37 = vector.broadcast %36 : vector<1x64xf32> to vector<2x64xf32>
    %38 = arith.addf %35, %37 : vector<2x64xf32>
    %39 = arith.negf %38 : vector<2x64xf32>
    %40 = math.exp %39 : vector<2x64xf32>
    %cst_16 = arith.constant 1.000000e+00 : f32
    %41 = vector.broadcast %cst_16 : f32 to vector<2x64xf32>
    %42 = arith.addf %41, %40 : vector<2x64xf32>
    %43 = arith.divf %41, %42 : vector<2x64xf32>
    %44 = arith.mulf %38, %43 : vector<2x64xf32>
    %c0_17 = arith.constant 0 : index
    %c0_18 = arith.constant 0 : index
    %45 = vector.load %arg7[%c0_17, %c0_18] : memref<64x128xf32, #tpu.memory_space<vmem>>, vector<64x128xf32>
    %cst_19 = arith.constant dense<0.000000e+00> : vector<2x128xf32>
    %46 = tpu.matmul %44, %45, %cst_19 {dimension_numbers = #tpu.dot_dimension_numbers<[1], [0], [0], [1], [0, 0, 1, 1], [], []>} : vector<2x64xf32>, vector<64x128xf32>, vector<2x128xf32> -> vector<2x128xf32>
    %c0_20 = arith.constant 0 : index
    %c0_21 = arith.constant 0 : index
    %47 = vector.load %arg8[%c0_20, %c0_21] : memref<1x128xf32, #tpu.memory_space<vmem>>, vector<1x128xf32>
    %48 = vector.broadcast %47 : vector<1x128xf32> to vector<2x128xf32>
    %49 = arith.addf %46, %48 : vector<2x128xf32>
    %c0_22 = arith.constant 0 : index
    %c0_23 = arith.constant 0 : index
    %50 = vector.load %arg9[%c0_22, %c0_23] : memref<2x128xf32, #tpu.memory_space<vmem>>, vector<2x128xf32>
    tpu.vector_store %arg9[%c0_22, %c0_23], %49 {strides = array<i32>} : memref<2x128xf32, #tpu.memory_space<vmem>>, vector<2x128xf32>,
    return
  }
  func.func @transform_0(%arg0: i32) -> (i32, i32) {
    %c0_i32 = arith.constant 0 : i32
    %c0_i32_0 = arith.constant 0 : i32
    return %arg0, %c0_i32 : i32, i32
  }
  func.func @transform_1(%arg0: i32) -> (i32, i32) {
    %c0_i32 = arith.constant 0 : i32
    %c0_i32_0 = arith.constant 0 : i32
    %c0_i32_1 = arith.constant 0 : i32
    return %c0_i32, %c0_i32_0 : i32, i32
  }
  func.func @transform_2(%arg0: i32) -> (i32, i32) {
    %c0_i32 = arith.constant 0 : i32
    %c0_i32_0 = arith.constant 0 : i32
    %c0_i32_1 = arith.constant 0 : i32
    return %c0_i32, %c0_i32_0 : i32, i32
  }
  func.func @transform_3(%arg0: i32) -> (i32, i32) {
    %c0_i32 = arith.constant 0 : i32
    %c0_i32_0 = arith.constant 0 : i32
    %c0_i32_1 = arith.constant 0 : i32
    return %c0_i32, %c0_i32_0 : i32, i32
  }
  func.func @transform_4(%arg0: i32) -> (i32, i32) {
    %c0_i32 = arith.constant 0 : i32
    %c0_i32_0 = arith.constant 0 : i32
    %c0_i32_1 = arith.constant 0 : i32
    return %c0_i32, %c0_i32_0 : i32, i32
  }
  func.func @transform_5(%arg0: i32) -> (i32, i32) {
    %c0_i32 = arith.constant 0 : i32
    %c0_i32_0 = arith.constant 0 : i32
    %c0_i32_1 = arith.constant 0 : i32
    return %c0_i32, %c0_i32_0 : i32, i32
  }
  func.func @transform_6(%arg0: i32) -> (i32, i32) {
    %c0_i32 = arith.constant 0 : i32
    %c0_i32_0 = arith.constant 0 : i32
    %c0_i32_1 = arith.constant 0 : i32
    return %c0_i32, %c0_i32_0 : i32, i32
  }
  func.func @transform_7(%arg0: i32) -> (i32, i32) {
    %c0_i32 = arith.constant 0 : i32
    %c0_i32_0 = arith.constant 0 : i32
    %c0_i32_1 = arith.constant 0 : i32
    return %c0_i32, %c0_i32_0 : i32, i32
  }
  func.func @transform_8(%arg0: i32) -> (i32, i32) {
    %c0_i32 = arith.constant 0 : i32
    %c0_i32_0 = arith.constant 0 : i32
    return %arg0, %c0_i32 : i32, i32
  }
}

</mosaic_0001>

<bundles_post_ra>
// kernel: tpu_custom_call.1
= control target key start
LH: loop header
LB: loop body
LE: loop exit
PB: predicated region body
PF: predicated region fallthrough
CT: control target
= control target key end

     0   :  { %13 = vsyncpa [#allocation3], 0  ;;  %s1051_s0 = inlined_call_operand.hbm [shape: f32[2,139], index: 0, kind: input, shape index: {}]   ;;  %s1052_s1 = inlined_call_operand.hbm [shape: f32[139,320], index: 1, kind: input, shape index: {}]   ;;  %s1053_s2 = inlined_call_operand.hbm [shape: f32[64,64], index: 2, kind: input, shape index: {}]   ;;  %s1054_s3 = inlined_call_operand.vmem [shape: f32[1,64], index: 3, kind: input, shape index: {}]   ;;  %s1055_s4 = inlined_call_operand.hbm [shape: f32[64,64], index: 4, kind: input, shape index: {}]   ;;  %s1056_s5 = inlined_call_operand.vmem [shape: f32[1,64], index: 5, kind: input, shape index: {}]   ;;  %s1057_s6 = inlined_call_operand.hbm [shape: f32[64,128], index: 6, kind: input, shape index: {}]   ;;  %s1058_s7 = inlined_call_operand.vmem [shape: f32[1,128], index: 7, kind: input, shape index: {}]   ;;  %s1059_s8 = inlined_call_operand.hbm [shape: f32[2,128], index: 8, kind: output, shape index: {}]  }
   0x1   :  { %14 = vsyncpa [#allocation6], 0 }
   0x2   :  { %15 = vsyncpa [#allocation9], 0 }
   0x3   :  { %16 = vsyncpa [#allocation4], 0  ;;  %s900_s27 = smov [#allocation5]  }
   0x4   :  { %s32_s28 = sshll.u32 %s900_s27, 4  ;;  %s33_s28 = int_to_ptr.vmem [resolvable:$true] %s32_s28 }
   0x5   :  { %s780_s29 = scalar_lea.vmem %s33_s28, 6912  ;;  %p785_p1 = scmp.lt.s32.totalorder %s33_s28, %s33_s28 }
   0x6   :  { %p781_p0 = scmp.ne.s32.totalorder %s33_s28, %s780_s29  ;;  %p786_p2 = scmp.lt.s32.totalorder %s780_s29, %s780_s29 }
   0x8   :  { %p787_p3 = por %p786_p2, %p785_p1 }
   0xa   :  { %p788_p4 = pnand %p787_p3, %p781_p0 }
   0xc   :  { %791 = shalt.err (!%p788_p4)
}
   0xd   :  { %s901_s30 = smov 384   ;;  %s902_s9 = smov 24  }
   0xe   :  { %38 = dma.hbm_to_vmem [thread:$0]  %s1052_s1, 6912, %s33_s28, [#allocation6], %s901_s30, %s901_s30, %s902_s9  }
   0xf   :  { %s903_s12 = smov [#allocation8]   ;;  %s904_s14 = smov [#allocation2]  }
  0x10   :  { %s58_s13 = sshll.u32 %s903_s12, 4  ;;  %s23_s15 = sshll.u32 %s904_s14, 4  ;;  %s59_s13 = int_to_ptr.vmem [resolvable:$true] %s58_s13  ;;  %s24_s15 = int_to_ptr.vmem [resolvable:$true] %s23_s15 }
  0x11   :  { %s800_s16 = scalar_lea.vmem %s59_s13, 1024  ;;  %p805_p6 = scmp.lt.s32.totalorder %s59_s13, %s59_s13 }
  0x12   :  { %p801_p5 = scmp.ne.s32.totalorder %s59_s13, %s800_s16  ;;  %p806_p7 = scmp.lt.s32.totalorder %s800_s16, %s800_s16 }
  0x14   :  { %p807_p8 = por %p806_p7, %p805_p6 }
  0x16   :  { %p808_p9 = pnand %p807_p8, %p801_p5 }
  0x18   :  { %811 = shalt.err (!%p808_p9)
}
  0x19   :  { %s905_s17 = smov 128   ;;  %s906_s18 = smov 8  }
  0x1a   :  { %64 = dma.hbm_to_vmem [thread:$0]  %s1055_s4, 1024, %s59_s13, [#allocation9], %s905_s17, %s905_s17, %s906_s18  }
  0x1b   :  { %s820_s1 = scalar_lea.vmem %s24_s15, 64  ;;  %p825_p11 = scmp.lt.s32.totalorder %s24_s15, %s24_s15 }
  0x1c   :  { %p821_p10 = scmp.ne.s32.totalorder %s24_s15, %s820_s1  ;;  %p826_p12 = scmp.lt.s32.totalorder %s820_s1, %s820_s1 }
  0x1e   :  { %p827_p13 = por %p826_p12, %p825_p11 }
  0x20   :  { %p828_p0 = pnand %p827_p13, %p821_p10 }
  0x22   :  { %831 = shalt.err (!%p828_p0)
}
  0x23   :  { %26 = dma.hbm_to_vmem [thread:$0]  %s1051_s0, 64, %s24_s15, [#allocation3]  }
  0x24   :  { %s907_s23 = smov [#allocation7]   ;;  %s908_s25 = smov [#allocation10]  }
  0x25   :  { %s44_s24 = sshll.u32 %s907_s23, 4  ;;  %s72_s26 = sshll.u32 %s908_s25, 4  ;;  %s45_s24 = int_to_ptr.vmem [resolvable:$true] %s44_s24  ;;  %s73_s26 = int_to_ptr.vmem [resolvable:$true] %s72_s26 }
  0x26   :  { %s840_s27 = scalar_lea.vmem %s45_s24, 1024  ;;  %p845_p2 = scmp.lt.s32.totalorder %s45_s24, %s45_s24 }
  0x27   :  { %p841_p1 = scmp.ne.s32.totalorder %s45_s24, %s840_s27  ;;  %p846_p3 = scmp.lt.s32.totalorder %s840_s27, %s840_s27 }
  0x29   :  { %p847_p4 = por %p846_p3, %p845_p2 }
  0x2b   :  { %p848_p5 = pnand %p847_p4, %p841_p1 }
  0x2d   :  { %851 = shalt.err (!%p848_p5)
}
  0x2e   :  { %50 = dma.hbm_to_vmem [thread:$0]  %s1053_s2, 1024, %s45_s24, [#allocation6], %s905_s17, %s905_s17, %s906_s18  }
  0x2f   :  { %s860_s0 = scalar_lea.vmem %s73_s26, 1024  ;;  %p865_p7 = scmp.lt.s32.totalorder %s73_s26, %s73_s26 }
  0x30   :  { %p861_p6 = scmp.ne.s32.totalorder %s73_s26, %s860_s0  ;;  %p866_p8 = scmp.lt.s32.totalorder %s860_s0, %s860_s0 }
  0x32   :  { %p867_p9 = por %p866_p8, %p865_p7 }
  0x34   :  { %p868_p10 = pnand %p867_p9, %p861_p6 }
  0x36   :  { %871 = shalt.err (!%p868_p10)
}
  0x37   :  { %78 = dma.hbm_to_vmem [thread:$0]  %s1057_s6, 1024, %s73_s26, [#allocation9], %s905_s17, %s905_s17, %s906_s18  }
  0x38   :  { %892 = dma.done.wait [#allocation3], 64  }
  0x39   :  { %893 = vsyncadd [#allocation3], 4294967232 }
  0x3a   :  { %894 = dma.done.wait [#allocation6], 7936  }
  0x3b   :  { %895 = vsyncadd [#allocation6], 4294959360 }
  0x3c   :  { %896 = dma.done.wait [#allocation9], 2048  }
  0x3d   :  { %897 = vsyncadd [#allocation9], 4294965248  ;;  %v143_v0 = vld [vmem:[#allocation5 + $0x170] sm:$0xff]  ;;  %v142_v1 = vld [vmem:[#allocation5 + $0x168] sm:$0xff]  ;;  %vm161_vm0 = vcmask 89088   ;;  %vm164_vm1 = vcmask 1042432  }
  0x3e   :  { %v140_v2 = vld [vmem:[#allocation5 + $0x158] sm:$0xff]  ;;  %174 = vmatprep.subr.mxu0 %v143_v0  ;;  %v139_v3 = vld [vmem:[#allocation5 + $0x150] sm:$0xff]  ;;  %v137_v4 = vld [vmem:[#allocation5 + $0x140] sm:$0xff]  ;;  %v909_v39 = vmov 0.0   ;;  %vm910_vm2 = vmmov 0   ;;  %s911_s2 = smov 64  }
  0x3f   :  { %175 = vmatpush1.msra.mxu0 %v142_v1  ;;  %v136_v5 = vld [vmem:[#allocation5 + $0x138] sm:$0xff]  ;;  %v134_v6 = vld [vmem:[#allocation5 + $0x128] sm:$0xff]  ;;  %v133_v7 = vld [vmem:[#allocation5 + $0x120] sm:$0xff]  ;;  %245 = vmatprep.subr.mxu1 %v909_v39  ;;  %vm355_vm3 = vcmask 523264   ;;  %s912_s13 = smov [#allocation11]  }
  0x40   :  { %176 = vmatprep.subr.mxu0 %v140_v2  ;;  %v131_v8 = vld [vmem:[#allocation5 + $0x110] sm:$0xff]  ;;  %v130_v9 = vld [vmem:[#allocation5 + $0x108] sm:$0xff]  ;;  %v128_v10 = vld [vmem:[#allocation5 + $0xf8] sm:$0xff]  ;;  %s627_s14 = sshll.u32 %s912_s13, 4  ;;  %s628_s14 = int_to_ptr.vmem [resolvable:$true] %s627_s14 }
  0x41   :  { %177 = vmatpush1.msra.mxu0 %v139_v3  ;;  %v127_v11 = vld [vmem:[#allocation5 + $0xf0] sm:$0xff]  ;;  %v125_v12 = vld [vmem:[#allocation5 + $0xe0] sm:$0xff]  ;;  %v124_v13 = vld [vmem:[#allocation5 + $0xd8] sm:$0xff]  ;;  %p877_p12 = scmp.lt.s32.totalorder %s628_s14, %s628_s14 }
  0x42   :  { %178 = vmatprep.subr.mxu0 %v137_v4  ;;  %v122_v14 = vld [vmem:[#allocation5 + $0xc8] sm:$0xff]  ;;  %v982_v15 = vld.sshfl [vmem:[#allocation2] sm:$0x33 pattern:$0x76325410]  ;;  %v121_v16 = vld [vmem:[#allocation5 + $0xc0] sm:$0xff] }
  0x43   :  { %179 = vmatpush1.msra.mxu0 %v136_v5  ;;  %v159_v17 = vcombine.high %v982_v15, %v982_v15  ;;  %v119_v18 = vld [vmem:[#allocation5 + $0xb0] sm:$0xff]  ;;  %v118_v19 = vld [vmem:[#allocation5 + $0xa8] sm:$0xff]  ;;  %v116_v20 = vld [vmem:[#allocation5 + $0x98] sm:$0xff] }
  0x44   :  { %180 = vmatprep.subr.mxu0 %v134_v6  ;;  %v115_v21 = vld [vmem:[#allocation5 + $0x90] sm:$0xff]  ;;  %v113_v22 = vld [vmem:[#allocation5 + $0x80] sm:$0xff]  ;;  %v112_v23 = vld [vmem:[#allocation5 + $0x78] sm:$0xff] }
  0x45   :  { %181 = vmatpush1.msra.mxu0 %v133_v7  ;;  %641 = vmatprep.mubr.msk.f32.mxu0 %vm161_vm0, %v159_v17  ;;  %v110_v24 = vld [vmem:[#allocation5 + $0x68] sm:$0xff]  ;;  %v109_v25 = vld [vmem:[#allocation5 + $0x60] sm:$0xff]  ;;  %v107_v26 = vld [vmem:[#allocation5 + $0x50] sm:$0xff] }
  0x46   :  { %182 = vmatprep.subr.mxu0 %v131_v8  ;;  %643 = vmatprep.mubr.msk.f32.mxu1 %vm161_vm0, %v159_v17  ;;  %v106_v27 = vld [vmem:[#allocation5 + $0x48] sm:$0xff]  ;;  %v104_v28 = vld [vmem:[#allocation5 + $0x38] sm:$0xff]  ;;  %v103_v29 = vld [vmem:[#allocation5 + $0x30] sm:$0xff] }
  0x47   :  { %183 = vmatpush1.msra.mxu0 %v130_v9  ;;  %v101_v30 = vld [vmem:[#allocation5 + $0x20] sm:$0xff]  ;;  %v100_v31 = vld [vmem:[#allocation5 + $0x18] sm:$0xff]  ;;  %v98_v32 = vld [vmem:[#allocation5 + $0x8] sm:$0xff] }
  0x48   :  { %184 = vmatprep.subr.mxu0 %v128_v10  ;;  %v97_v33 = vld [vmem:[#allocation5] sm:$0xff]  ;;  %v148_v35 = vld [vmem:[#allocation5 + $0x198] sm:$0x7]  ;;  %v146_v36 = vld [vmem:[#allocation5 + $0x188] sm:$0xff] }
  0x49   :  { %185 = vmatpush1.msra.mxu0 %v127_v11  ;;  %v149_v34 = vld [vmem:[#allocation5 + $0x1a0] sm:$0x7]  ;;  %v144_v38 = vld [vmem:[#allocation5 + $0x178] sm:$0xff]  ;;  %v138_v41 = vld [vmem:[#allocation5 + $0x148] sm:$0xff] }
  0x4a   :  { %186 = vmatprep.subr.mxu0 %v125_v12  ;;  %v145_v37 = vld [vmem:[#allocation5 + $0x180] sm:$0xff]  ;;  %246 = vmatpush1.msra.mxu1 %v144_v38  ;;  %v135_v42 = vld [vmem:[#allocation5 + $0x130] sm:$0xff]  ;;  %v347_v43 = vld [vmem:[#allocation7 + $0x38] sm:$0xff] }
  0x4b   :  { %187 = vmatpush1.msra.mxu0 %v124_v13  ;;  %v141_v40 = vld [vmem:[#allocation5 + $0x160] sm:$0xff]  ;;  %247 = vmatprep.subr.mxu1 %v909_v39  ;;  %v132_v45 = vld [vmem:[#allocation5 + $0x118] sm:$0xff]  ;;  %v344_v48 = vld [vmem:[#allocation7 + $0x20] sm:$0xff] }
  0x4c   :  { %188 = vmatprep.subr.mxu0 %v122_v14  ;;  %248 = vmatpush1.msra.mxu1 %v141_v40  ;;  %v346_v44 = vld [vmem:[#allocation7 + $0x30] sm:$0xff]  ;;  %v345_v46 = vld [vmem:[#allocation7 + $0x28] sm:$0xff]  ;;  %v126_v49 = vld [vmem:[#allocation5 + $0xe8] sm:$0xff] }
  0x4d   :  { %189 = vmatpush1.msra.mxu0 %v121_v16  ;;  %249 = vmatprep.subr.mxu1 %v909_v39  ;;  %v129_v47 = vld [vmem:[#allocation5 + $0x100] sm:$0xff]  ;;  %v343_v50 = vld [vmem:[#allocation7 + $0x18] sm:$0xff]  ;;  %v123_v51 = vld [vmem:[#allocation5 + $0xd0] sm:$0xff] }
  0x4e   :  { %190 = vmatprep.subr.mxu0 %v119_v18  ;;  %250 = vmatpush1.msra.mxu1 %v138_v41  ;;  %v342_v52 = vld [vmem:[#allocation7 + $0x10] sm:$0xff]  ;;  %v120_v53 = vld [vmem:[#allocation5 + $0xb8] sm:$0xff]  ;;  %v114_v55 = vld [vmem:[#allocation5 + $0x88] sm:$0xff] }
  0x4f   :  { %191 = vmatpush1.msra.mxu0 %v118_v19  ;;  %251 = vmatprep.subr.mxu1 %v909_v39  ;;  %v117_v54 = vld [vmem:[#allocation5 + $0xa0] sm:$0xff]  ;;  %v111_v56 = vld [vmem:[#allocation5 + $0x70] sm:$0xff]  ;;  %v108_v57 = vld [vmem:[#allocation5 + $0x58] sm:$0xff] }
  0x50   :  { %192 = vmatprep.subr.mxu0 %v116_v20  ;;  %252 = vmatpush1.msra.mxu1 %v135_v42  ;;  %v105_v58 = vld [vmem:[#allocation5 + $0x40] sm:$0xff]  ;;  %v102_v59 = vld [vmem:[#allocation5 + $0x28] sm:$0xff]  ;;  %v99_v60 = vld [vmem:[#allocation5 + $0x10] sm:$0xff] }
  0x51   :  { %193 = vmatpush1.msra.mxu0 %v115_v21  ;;  %253 = vmatprep.subr.mxu1 %v909_v39  ;;  %v150_v61 = vld [vmem:[#allocation5 + $0x1a8] sm:$0x7]  ;;  %v147_v62 = vld [vmem:[#allocation5 + $0x190] sm:$0xff]  ;;  %v341_v7 = vld [vmem:[#allocation7 + $0x8] sm:$0xff] }
  0x52   :  { %194 = vmatprep.subr.mxu0 %v113_v22  ;;  %254 = vmatpush1.msra.mxu1 %v132_v45  ;;  %v340_v8 = vld [vmem:[#allocation7] sm:$0xff]  ;;  %v444_v16 = vld [vmem:[#allocation8 + $0x38] sm:$0xff]  ;;  %v443_v17 = vld [vmem:[#allocation8 + $0x30] sm:$0xff] }
  0x53   :  { %195 = vmatpush1.msra.mxu0 %v112_v23  ;;  %255 = vmatprep.subr.mxu1 %v909_v39  ;;  %v442_v18 = vld [vmem:[#allocation8 + $0x28] sm:$0xff]  ;;  %v441_v19 = vld [vmem:[#allocation8 + $0x20] sm:$0xff]  ;;  %v440_v20 = vld [vmem:[#allocation8 + $0x18] sm:$0xff] }
  0x54   :  { %196 = vmatprep.subr.mxu0 %v110_v24  ;;  %256 = vmatpush1.msra.mxu1 %v129_v47  ;;  %v439_v21 = vld [vmem:[#allocation8 + $0x10] sm:$0xff]  ;;  %v438_v22 = vld [vmem:[#allocation8 + $0x8] sm:$0xff]  ;;  %v437_v23 = vld [vmem:[#allocation8] sm:$0xff] }
  0x55   :  { %197 = vmatpush1.msra.mxu0 %v109_v25  ;;  %257 = vmatprep.subr.mxu1 %v909_v39  ;;  %v647_v25 = vld [vmem:[%s1054_s3] ss:$0 sm:$0xff]  ;;  %v539_v40 = vld [vmem:[#allocation10 + $0x38] sm:$0xff]  ;;  %v538_v41 = vld [vmem:[#allocation10 + $0x30] sm:$0xff] }
  0x56   :  { %198 = vmatprep.subr.mxu0 %v107_v26  ;;  %258 = vmatpush1.msra.mxu1 %v126_v49  ;;  %v537_v42 = vld [vmem:[#allocation10 + $0x28] sm:$0xff]  ;;  %v534_v45 = vld [vmem:[#allocation10 + $0x10] sm:$0xff]  ;;  %v532_v47 = vld [vmem:[#allocation10] sm:$0xff] }
  0x57   :  { %199 = vmatpush1.msra.mxu0 %v106_v27  ;;  %259 = vmatprep.subr.mxu1 %v909_v39 }
  0x58   :  { %200 = vmatprep.subr.mxu0 %v104_v28  ;;  %260 = vmatpush1.msra.mxu1 %v123_v51 }
  0x59   :  { %201 = vmatpush1.msra.mxu0 %v103_v29  ;;  %261 = vmatprep.subr.mxu1 %v909_v39 }
  0x5a   :  { %202 = vmatprep.subr.mxu0 %v101_v30  ;;  %262 = vmatpush1.msra.mxu1 %v120_v53 }
  0x5b   :  { %203 = vmatpush1.msra.mxu0 %v100_v31  ;;  %263 = vmatprep.subr.mxu1 %v909_v39 }
  0x5c   :  { %204 = vmatprep.subr.mxu0 %v98_v32  ;;  %264 = vmatpush1.msra.mxu1 %v117_v54 }
  0x5d   :  { %205 = vmatpush1.msra.mxu0 %v97_v33  ;;  %265 = vmatprep.subr.mxu1 %v909_v39 }
  0x5e   :  { %639 = vmatprep.subr.msk.mxu0 %vm164_vm1, %v149_v34  ;;  %266 = vmatpush1.msra.mxu1 %v114_v55 }
  0x5f   :  { %640 = vmatpush2.msk.msra.mxu0 %vm164_vm1, %v148_v35  ;;  %267 = vmatprep.subr.mxu1 %v909_v39 }
  0x60   :  { %236 = vmatprep.subr.mxu0 %v146_v36  ;;  %268 = vmatpush1.msra.mxu1 %v111_v56 }
  0x61   :  { %237 = vmatpush2.msra.mxu0 %v145_v37  ;;  %269 = vmatprep.subr.mxu1 %v909_v39 }
  0x62   :  { %239 = vmatmul.mubr.f32.vlgmr.msra.gmra.mxu0 %v982_v15  ;;  %682 = vmatprep.subr.mxu0 %v909_v39 }
  0x63   :  { %683 = vmatpush3.msra.mxu0 %v347_v43  ;;  %270 = vmatpush1.msra.mxu1 %v108_v57  ;;  %v536_v43 = vld [vmem:[#allocation10 + $0x20] sm:$0xff] }
  0x64   :  { %684 = vmatprep.subr.mxu0 %v909_v39  ;;  %271 = vmatprep.subr.mxu1 %v909_v39 }
  0x65   :  { %685 = vmatpush3.msra.mxu0 %v346_v44  ;;  %272 = vmatpush1.msra.mxu1 %v105_v58  ;;  %v535_v44 = vld [vmem:[#allocation10 + $0x18] sm:$0xff] }
  0x66   :  { %686 = vmatprep.subr.mxu0 %v909_v39  ;;  %273 = vmatprep.subr.mxu1 %v909_v39 }
  0x67   :  { %687 = vmatpush3.msra.mxu0 %v345_v46  ;;  %274 = vmatpush1.msra.mxu1 %v102_v59  ;;  %v533_v46 = vld [vmem:[#allocation10 + $0x8] sm:$0xff] }
  0x68   :  { %688 = vmatprep.subr.mxu0 %v909_v39  ;;  %275 = vmatprep.subr.mxu1 %v909_v39 }
  0x69   :  { %689 = vmatpush3.msra.mxu0 %v344_v48  ;;  %276 = vmatpush1.msra.mxu1 %v99_v60  ;;  %v650_v48 = vld [vmem:[%s1056_s5] ss:$0 sm:$0xff]  ;;  %s872_s5 = scalar_lea.vmem %s628_s14, 32 }
  0x6a   :  { %690 = vmatprep.subr.mxu0 %v909_v39  ;;  %305 = vmatprep.subr.mxu1 %v909_v39  ;;  %p873_p11 = scmp.ne.s32.totalorder %s628_s14, %s872_s5  ;;  %p878_p13 = scmp.lt.s32.totalorder %s872_s5, %s872_s5 }
  0x6b   :  { %691 = vmatpush3.msra.mxu0 %v343_v50  ;;  %642 = vmatpush2.msk.msra.mxu1 %vm164_vm1, %v150_v61 }
  0x6c   :  { %692 = vmatprep.subr.mxu0 %v909_v39  ;;  %307 = vmatprep.subr.mxu1 %v909_v39  ;;  %p879_p0 = por %p878_p13, %p877_p12 }
  0x6d   :  { %693 = vmatpush3.msra.mxu0 %v342_v52  ;;  %308 = vmatpush2.msra.mxu1 %v147_v62 }
  0x6e   :  { %694 = vmatprep.subr.mxu0 %v909_v39  ;;  %310 = vmatmul.mubr.f32.vlgmr.msra.gmra.mxu1 %v982_v15  ;;  %p880_p1 = pnand %p879_p0, %p873_p11 }
  0x6f   :  { %701 = vmatprep.subr.mxu1 %v909_v39  ;;  %695 = vmatpush3.msra.mxu0 %v341_v7 }
  0x70   :  { %696 = vmatprep.subr.mxu0 %v909_v39  ;;  %698 = vmatprep.mubr.msk.f32.mxu0 %vm910_vm2, %v909_v39 }
  0x71   :  { %697 = vmatpush3.msra.mxu0 %v340_v8  ;;  %717 = vmatprep.mubr.msk.f32.mxu1 %vm910_vm2, %v909_v39 }
  0x72   :  { %720 = vmatprep.subr.mxu0 %v909_v39  ;;  %702 = vmatpush3.msra.mxu1 %v444_v16 }
  0x73   :  { %703 = vmatprep.subr.mxu1 %v909_v39 }
  0x74   :  { %704 = vmatpush3.msra.mxu1 %v443_v17 }
  0x75   :  { %705 = vmatprep.subr.mxu1 %v909_v39 }
  0x76   :  { %706 = vmatpush3.msra.mxu1 %v442_v18 }
  0x77   :  { %707 = vmatprep.subr.mxu1 %v909_v39 }
  0x78   :  { %708 = vmatpush3.msra.mxu1 %v441_v19 }
  0x79   :  { %709 = vmatprep.subr.mxu1 %v909_v39 }
  0x7a   :  { %710 = vmatpush3.msra.mxu1 %v440_v20 }
  0x7b   :  { %711 = vmatprep.subr.mxu1 %v909_v39 }
  0x7c   :  { %712 = vmatpush3.msra.mxu1 %v439_v21 }
  0x7d   :  { %713 = vmatprep.subr.mxu1 %v909_v39 }
  0x7e   :  { %714 = vmatpush3.msra.mxu1 %v438_v22 }
  0x7f   :  { %715 = vmatprep.subr.mxu1 %v909_v39 }
  0x80   :  { %716 = vmatpush3.msra.mxu1 %v437_v23 }
 0x122   :  { %v240_v63 = vpop.f32.mrf.mxu0 }
 0x123   :  { %v644_v0 = vmul.f32 -1.442695, %v240_v63 }
 0x124   :  { %v242_v1 = vpop.f32.mrf.mxu0 }
 0x125   :  { %752 = vpow2.f32 %v644_v0  ;;  %v645_v2 = vmul.f32 -1.442695, %v242_v1 }
 0x127   :  { %754 = vpow2.f32 %v645_v2 }
 0x12e   :  { %v311_v12 = vpop.f32.mrf.mxu1 }
 0x12f   :  { %v646_v24 = vmul.f32 -1.442695, %v311_v12 }
 0x130   :  { %v313_v13 = vpop.f32.mrf.mxu1 }
 0x132   :  { %v753_v3 = vpop.eup %752 }
 0x133   :  { %v321_v4 = vadd.f32 1.0, %v753_v3 }
 0x134   :  { %v755_v5 = vpop.eup %754 }
 0x135   :  { %v322_v6 = vadd.f32 1.0, %v755_v5  ;;  %756 = vrcp.f32 %v321_v4 }
 0x137   :  { %758 = vrcp.f32 %v322_v6 }
 0x138   :  { %760 = vpow2.f32 %v646_v24 }
 0x142   :  { %v757_v9 = vpop.eup %756 }
 0x144   :  { %v759_v10 = vpop.eup %758 }
 0x145   :  { %v334_v11 = vmul.f32 %v759_v10, %v757_v9  ;;  %v761_v30 = vpop.eup %760 }
 0x146   :  { %v330_v31 = vadd.f32 1.0, %v761_v30 }
 0x147   :  { %336 = vrot.lane.b32.xlu0 %v334_v11, %s911_s2 }
 0x1b9   :  { %v337_v14 = vpop.permute.xlu0 %336 }
 0x1ba   :  { %v339_v15 = vmul.f32 %v337_v14, %v334_v11 }
 0x1bc   :  { %699 = vmatmul.mubr.msk.f32.vlgmr.msra.gmra.mxu0 %vm355_vm3, %v339_v15 }
 0x1bd   :  { %736 = vmatprep.mubr.msk.f32.mxu0 %vm910_vm2, %v909_v39  ;;  %721 = vmatpush3.msra.mxu0 %v539_v40 }
 0x1be   :  { %722 = vmatprep.subr.mxu0 %v909_v39 }
 0x1bf   :  { %723 = vmatpush3.msra.mxu0 %v538_v41 }
 0x1c0   :  { %724 = vmatprep.subr.mxu0 %v909_v39 }
 0x1c1   :  { %725 = vmatpush3.msra.mxu0 %v537_v42 }
 0x1c2   :  { %726 = vmatprep.subr.mxu0 %v909_v39 }
 0x1c3   :  { %727 = vmatpush3.msra.mxu0 %v536_v43 }
 0x1c4   :  { %728 = vmatprep.subr.mxu0 %v909_v39 }
 0x1c5   :  { %729 = vmatpush3.msra.mxu0 %v535_v44 }
 0x1c6   :  { %730 = vmatprep.subr.mxu0 %v909_v39 }
 0x1c7   :  { %731 = vmatpush3.msra.mxu0 %v534_v45 }
 0x1c8   :  { %732 = vmatprep.subr.mxu0 %v909_v39 }
 0x1c9   :  { %733 = vmatpush3.msra.mxu0 %v533_v46 }
 0x1ca   :  { %734 = vmatprep.subr.mxu0 %v909_v39  ;;  %v653_v39 = vld [vmem:[%s1058_s7] ss:$0 sm:$0xff] }
 0x1cb   :  { %735 = vmatpush3.msra.mxu0 %v532_v47 }
 0x27c   :  { %v425_v26 = vpop.f32.mrf.mxu0 }
 0x27d   :  { %v426_v27 = vadd.f32 %v647_v25, %v425_v26 }
 0x27e   :  { %v700_v28 = vpop.f32.mrf.mxu0 }
 0x27f   :  { %v649_v29 = vmul.f32 -1.442695, %v426_v27 }
 0x281   :  { %762 = vpow2.f32 %v649_v29 }
 0x282   :  { %764 = vrcp.f32 %v330_v31 }
 0x28e   :  { %v763_v32 = vpop.eup %762 }
 0x28f   :  { %v432_v33 = vadd.f32 1.0, %v763_v32  ;;  %v765_v34 = vpop.eup %764 }
 0x290   :  { %v333_v36 = vmul.f32 %v765_v34, %v311_v12 }
 0x291   :  { %766 = vrcp.f32 %v432_v33 }
 0x29e   :  { %v767_v35 = vpop.eup %766 }
 0x29f   :  { %v435_v37 = vmul.f32 %v767_v35, %v426_v27 }
 0x2a1   :  { %v436_v38 = vmul.f32 %v435_v37, %v333_v36 }
 0x2a3   :  { %718 = vmatmul.mubr.msk.f32.vlgmr.msra.gmra.mxu1 %vm355_vm3, %v436_v38 }
 0x363   :  { %v521_v49 = vpop.f32.mrf.mxu1 }
 0x364   :  { %v522_v50 = vadd.f32 %v650_v48, %v521_v49 }
 0x365   :  { %v719_v51 = vpop.f32.mrf.mxu1 }
 0x366   :  { %v652_v52 = vmul.f32 -1.442695, %v522_v50 }
 0x368   :  { %768 = vpow2.f32 %v652_v52 }
 0x375   :  { %v769_v53 = vpop.eup %768 }
 0x376   :  { %v528_v54 = vadd.f32 1.0, %v769_v53 }
 0x378   :  { %770 = vrcp.f32 %v528_v54 }
 0x385   :  { %v771_v55 = vpop.eup %770 }
 0x386   :  { %v531_v56 = vmul.f32 %v771_v55, %v522_v50 }
 0x388   :  { %737 = vmatmul.mubr.msk.f32.vlgmr.msra.gmra.mxu0 %vm355_vm3, %v531_v56 }
 0x448   :  { %v616_v57 = vpop.f32.mrf.mxu0 }
 0x449   :  { %v617_v58 = vadd.f32 %v653_v39, %v616_v57 }
 0x44a   :  { %v738_v59 = vpop.f32.mrf.mxu0 }
 0x44b   :  { %620 = vst [vmem:[#allocation11] sm:$0x3] %v617_v58 }
 0x44c   :  { %883 = shalt.err (!%p880_p1)
}
 0x44d   :  { %630 = dma.vmem_to_hbm [thread:$0]  %s628_s14, 32, %s1059_s8, [#allocation4]  }
 0x44e   :  { %898 = dma.done.wait [#allocation4], 32  }
 0x44f   :  { %899 = vsyncadd [#allocation4], 4294967264 }
 0x450   :  { %634 = vsyncpa [#allocation3], 1 }
 0x451   :  { %635 = vsyncpa [#allocation6], 1 }
 0x452   :  { %636 = vsyncpa [#allocation9], 1 }
 0x453   :  { %637 = vsyncpa [#allocation4], 1 }

</bundles_post_ra>
